<compile_context>
chip_gen: v7x
topology: tpu7x:2x2x1
jax: 0.10.0
libtpu: 0.0.40
codegen_flags: <defaults>
</compile_context>

<pallas_src>
import jax
import jax.numpy as jnp
from jax.experimental import pallas as pl
from jax.experimental.pallas import tpu as pltpu

LOG_STD_MIN = -25.0
LOG_STD_MAX = 10.0

_TB_DEFAULT = 512          # batch tile (rows per grid step); multiple of 8
_LANES = 128               # vreg lane width


def _round_up(x, m):
    return ((x + m - 1) // m) * m


# --------------------------------------------------------------------------- #
# Kernel
# --------------------------------------------------------------------------- #
def _policy_kernel(x_ref, w1_ref, b1_ref, w2_ref, b2_ref, wh_ref, bh_ref,
                   lo_ref, hi_ref, out_ref):
    """One batch tile: 2x (Linear + ReLU) + fused (mean|log_std) head + clamp."""
    x = x_ref[...]
    if x.dtype != w1_ref.dtype:                        # trace-time branch only
        x = x.astype(w1_ref.dtype)

    # MXU matmuls with f32 accumulation; biases and epilogue stay f32.
    h1 = jnp.dot(x, w1_ref[...], preferred_element_type=jnp.float32) + b1_ref[...]
    h1 = jnp.maximum(h1, 0.0)

    h2 = jnp.dot(h1.astype(w2_ref.dtype), w2_ref[...],
                 preferred_element_type=jnp.float32) + b2_ref[...]
    h2 = jnp.maximum(h2, 0.0)

    # Fused heads: cols [0,A) = mean, [A,2A) = log_std, [2A,out_pad) = zero pad.
    heads = jnp.dot(h2.astype(wh_ref.dtype), wh_ref[...],
                    preferred_element_type=jnp.float32) + bh_ref[...]

    # Per-column clamp: mean columns get (-inf, +inf), log_std columns get
    # (LOG_STD_MIN, LOG_STD_MAX), pad columns stay exactly 0.
    out = jnp.minimum(jnp.maximum(heads, lo_ref[...]), hi_ref[...])
    out_ref[...] = out.astype(out_ref.dtype)


# --------------------------------------------------------------------------- #
# One-time parameter preparation (fuse heads, pad lanes, cast dtype)
# --------------------------------------------------------------------------- #
def prepare_policy_params(params, *, compute_dtype=jnp.float32):
    """Fuse/pad/cast weights once so the per-forward path is only the kernel.

    Note: for best MXU utilisation choose hidden_dim as a multiple of 256 on
    v6e/v7x (128 on v5e) when configuring the module.
    """
    state_dim, hidden_dim = params["w1"].shape
    action_dim = params["wm"].shape[1]
    out_dim = 2 * action_dim
    out_pad = _round_up(out_dim, _LANES)               # lane-dense head width
    pad = out_pad - out_dim

    wh = jnp.concatenate([params["wm"], params["ws"]], axis=1)     # [H, 2A]
    bh = jnp.concatenate([params["bm"], params["bs"]], axis=1)     # [1, 2A]
    if pad:
        wh = jnp.pad(wh, ((0, 0), (0, pad)))           # zero-filled pad columns
        bh = jnp.pad(bh, ((0, 0), (0, pad)))

    lo = jnp.concatenate([jnp.full((1, action_dim), -jnp.inf, jnp.float32),
                          jnp.full((1, action_dim), LOG_STD_MIN, jnp.float32),
                          jnp.full((1, pad), -jnp.inf, jnp.float32)], axis=1)
    hi = jnp.concatenate([jnp.full((1, action_dim), jnp.inf, jnp.float32),
                          jnp.full((1, action_dim), LOG_STD_MAX, jnp.float32),
                          jnp.full((1, pad), jnp.inf, jnp.float32)], axis=1)

    cd = jnp.dtype(compute_dtype)
    return {
        "w1": params["w1"].astype(cd), "b1": params["b1"],
        "w2": params["w2"].astype(cd), "b2": params["b2"],
        "wh": wh.astype(cd), "bh": bh,
        "lo": lo, "hi": hi,
        "state_dim": state_dim, "hidden_dim": hidden_dim,
        "action_dim": action_dim, "out_pad": out_pad,
        "compute_dtype": cd,
    }


# --------------------------------------------------------------------------- #
# Tiling / VMEM heuristics
# --------------------------------------------------------------------------- #
def _choose_batch_tile(batch, max_tb):
    b8 = _round_up(batch, 8)
    tb = min(_round_up(max_tb, 8), b8)
    # Give the grid at least two steps (when the batch allows it) so the
    # "parallel" batch axis can be sharded across v7x's two TensorCores.
    if batch >= 16:
        tb = min(tb, _round_up(pl.cdiv(b8, 2), 8))
    # Limit full-tile padding waste to ~12.5% of the batch.
    while tb > 8 and _round_up(batch, tb) - b8 > max(b8 // 8, 8):
        tb = max(8, _round_up(tb // 2, 8))
    return tb


def _vmem_limit_bytes(tb, state_dim, hidden_dim, out_pad, w_bytes):
    io = 2 * tb * state_dim * w_bytes + 2 * tb * out_pad * 4   # double-buffered tiles
    wgt = (state_dim * hidden_dim + hidden_dim * hidden_dim
           + hidden_dim * out_pad) * w_bytes                   # single-buffered weights
    small = (2 * hidden_dim + 3 * out_pad) * 4                 # biases + lo/hi rows
    act = 4 * tb * hidden_dim * 4                              # h1/h2 intermediates + slack
    need = io + wgt + small + act + (8 << 20)                  # compiler headroom
    try:
        # ~96 MiB on v5e/v6e (128 MiB VMEM), ~48 MiB on v7x (64 MiB VMEM).
        cap = (pltpu.get_tpu_info().vmem_capacity_bytes * 3) // 4
    except Exception:                                          # pragma: no cover
        cap = 48 << 20
    return int(min(max(need, 16 << 20), cap))


# --------------------------------------------------------------------------- #
# Forward wrapper
# --------------------------------------------------------------------------- #
def gaussian_policy_forward(state, prepared, *, batch_tile=_TB_DEFAULT):
    """Runs GaussianPolicyNetwork.forward. Returns (mean, log_std)."""
    batch, state_dim = state.shape
    assert state_dim == prepared["state_dim"]
    hidden_dim = prepared["hidden_dim"]
    action_dim = prepared["action_dim"]
    out_pad = prepared["out_pad"]
    cd = prepared["compute_dtype"]

    # Pre-cast the state so the activation HBM stream is already the compute
    # dtype (halves DMA bytes on the bf16 path; no-op for f32).
    x = state if state.dtype == cd else state.astype(cd)

    tb = _choose_batch_tile(batch, batch_tile)
    grid_steps = pl.cdiv(batch, tb)
    padded_batch = grid_steps * tb
    if padded_batch != batch:
        x = jnp.pad(x, ((0, padded_batch - batch), (0, 0)))

    w_bytes = cd.itemsize
    flops = 2 * padded_batch * (state_dim * hidden_dim
                                + hidden_dim * hidden_dim
                                + hidden_dim * out_pad)
    bytes_accessed = (padded_batch * state_dim * w_bytes
                      + padded_batch * out_pad * 4
                      + (state_dim * hidden_dim + hidden_dim * hidden_dim
                         + hidden_dim * out_pad) * w_bytes
                      + (2 * hidden_dim + 3 * out_pad) * 4)

    def _call(weight_mode):
        def resident(shape):
            if weight_mode is None:
                return pl.BlockSpec(shape, lambda i: (0, 0))
            return pl.BlockSpec(shape, lambda i: (0, 0), pipeline_mode=weight_mode)

        in_specs = [
            pl.BlockSpec((tb, state_dim), lambda i: (i, 0)),   # state tile (pipelined)
            resident((state_dim, hidden_dim)),                 # w1 (VMEM-resident)
            resident((1, hidden_dim)),                         # b1
            resident((hidden_dim, hidden_dim)),                # w2
            resident((1, hidden_dim)),                         # b2
            resident((hidden_dim, out_pad)),                   # fused head weight (padded)
            resident((1, out_pad)),                            # fused head bias
            resident((1, out_pad)),                            # per-column lower bound
            resident((1, out_pad)),                            # per-column upper bound
        ]
        out_spec = pl.BlockSpec((tb, out_pad), lambda i: (i, 0))

        return pl.pallas_call(
            _policy_kernel,
            grid=(grid_steps,),
            in_specs=in_specs,
            out_specs=out_spec,
            out_shape=jax.ShapeDtypeStruct((padded_batch, out_pad), jnp.float32),
            compiler_params=pltpu.CompilerParams(
                dimension_semantics=("parallel",),
                vmem_limit_bytes=_vmem_limit_bytes(tb, state_dim, hidden_dim,
                                                   out_pad, w_bytes),
            ),
            cost_estimate=pl.CostEstimate(flops=flops, transcendentals=0,
                                          bytes_accessed=bytes_accessed),
        )(x, prepared["w1"], prepared["b1"], prepared["w2"], prepared["b2"],
          prepared["wh"], prepared["bh"], prepared["lo"], prepared["hi"])

    try:
        # Single-buffer the resident (constant index_map) weights to halve
        # their VMEM footprint; state/output tiles stay double-buffered.
        out = _call(pl.Buffered(1))
    except Exception:   # pragma: no cover - fallback if pipeline_mode unsupported
        out = _call(None)

    out = out[:batch]
    mean = out[:, :action_dim]
    log_std = out[:, action_dim:2 * action_dim]
    return mean, log_std


# --------------------------------------------------------------------------- #
# Init + reference (matches the PyTorch module's __init__ / forward)
# --------------------------------------------------------------------------- #
def init_params(key, state_dim, hidden_dim, action_dim, init_w=0.003):
    """nn.Linear default init U(-1/sqrt(fan_in), ..) for trunk; U(-init_w, ..)
    for mean / log_std heads.  Weights stored as [in, out] for x @ W."""
    ks = jax.random.split(key, 8)

    def lin_default(kw, kb, fan_in, fan_out):
        bound = 1.0 / jnp.sqrt(jnp.float32(fan_in))
        w = jax.random.uniform(kw, (fan_in, fan_out), jnp.float32, -bound, bound)
        b = jax.random.uniform(kb, (1, fan_out), jnp.float32, -bound, bound)
        return w, b

    def lin_small(kw, kb, fan_in, fan_out):
        w = jax.random.uniform(kw, (fan_in, fan_out), jnp.float32, -init_w, init_w)
        b = jax.random.uniform(kb, (1, fan_out), jnp.float32, -init_w, init_w)
        return w, b

    w1, b1 = lin_default(ks[0], ks[1], state_dim, hidden_dim)
    w2, b2 = lin_default(ks[2], ks[3], hidden_dim, hidden_dim)
    wm, bm = lin_small(ks[4], ks[5], hidden_dim, action_dim)
    ws, bs = lin_small(ks[6], ks[7], hidden_dim, action_dim)

    return {"w1": w1, "b1": b1, "w2": w2, "b2": b2,
            "wm": wm, "bm": bm, "ws": ws, "bs": bs}


def _reference_forward(state, p):
    h1 = jnp.maximum(state @ p["w1"] + p["b1"], 0.0)
    h2 = jnp.maximum(h1 @ p["w2"] + p["b2"], 0.0)
    mean = h2 @ p["wm"] + p["bm"]
    log_std = jnp.clip(h2 @ p["ws"] + p["bs"], LOG_STD_MIN, LOG_STD_MAX)
    return mean, log_std


if __name__ == "__main__":
    state_dim, hidden_dim, action_dim = 16, 32, 8
    batch = 8

    key = jax.random.PRNGKey(0)
    k_params, k_state = jax.random.split(key)

    params = init_params(k_params, state_dim, hidden_dim, action_dim)
    state = jax.random.normal(k_state, (batch, state_dim), jnp.float32)

    # One-time param prep (f32 compute keeps the 1e-5 check; pass
    # compute_dtype=jnp.bfloat16 on v6e/v7x and loosen tolerances).
    prepared = prepare_policy_params(params, compute_dtype=jnp.float32)

    mean, log_std = gaussian_policy_forward(state, prepared)
    jax.block_until_ready((mean, log_std))

    # sanity check against a pure-JAX reference
    ref_mean, ref_log_std = _reference_forward(state, params)
    assert mean.shape == (batch, action_dim) and log_std.shape == (batch, action_dim)
    assert jnp.allclose(mean, ref_mean, atol=1e-5, rtol=1e-5)
    assert jnp.allclose(log_std, ref_log_std, atol=1e-5, rtol=1e-5)

    print("KERNEL_OK")
</pallas_src>

<mosaic_0001>
module attributes {stable_mosaic.version = 11 : i64} {
  func.func @_policy_kernel(%arg0: i32, %arg1: memref<8x16xf32, #tpu.memory_space<vmem>>, %arg2: memref<16x32xf32, #tpu.memory_space<vmem>>, %arg3: memref<1x32xf32, #tpu.memory_space<vmem>>, %arg4: memref<32x32xf32, #tpu.memory_space<vmem>>, %arg5: memref<1x32xf32, #tpu.memory_space<vmem>>, %arg6: memref<32x128xf32, #tpu.memory_space<vmem>>, %arg7: memref<1x128xf32, #tpu.memory_space<vmem>>, %arg8: memref<1x128xf32, #tpu.memory_space<vmem>>, %arg9: memref<1x128xf32, #tpu.memory_space<vmem>>, %arg10: memref<8x128xf32, #tpu.memory_space<vmem>>) attributes {dimension_semantics = [#tpu.dimension_semantics<parallel>], iteration_bounds = array<i64: 1>, scalar_prefetch = 0 : i64, scratch_operands = 0 : i64, tpu.core_type = #tpu.core_type<tc>, window_params = [{transform_indices = @transform_0, window_bounds = array<i64: 8, 16>}, {pipeline_mode = #tpu.pipeline_mode<synchronous>, transform_indices = @transform_1, window_bounds = array<i64: 16, 32>}, {pipeline_mode = #tpu.pipeline_mode<synchronous>, transform_indices = @transform_2, window_bounds = array<i64: 1, 32>}, {pipeline_mode = #tpu.pipeline_mode<synchronous>, transform_indices = @transform_3, window_bounds = array<i64: 32, 32>}, {pipeline_mode = #tpu.pipeline_mode<synchronous>, transform_indices = @transform_4, window_bounds = array<i64: 1, 32>}, {pipeline_mode = #tpu.pipeline_mode<synchronous>, transform_indices = @transform_5, window_bounds = array<i64: 32, 128>}, {pipeline_mode = #tpu.pipeline_mode<synchronous>, transform_indices = @transform_6, window_bounds = array<i64: 1, 128>}, {pipeline_mode = #tpu.pipeline_mode<synchronous>, transform_indices = @transform_7, window_bounds = array<i64: 1, 128>}, {pipeline_mode = #tpu.pipeline_mode<synchronous>, transform_indices = @transform_8, window_bounds = array<i64: 1, 128>}, {transform_indices = @transform_9, window_bounds = array<i64: 8, 128>}]} {
    %c0 = arith.constant 0 : index
    %c0_0 = arith.constant 0 : index
    %0 = vector.load %arg1[%c0, %c0_0] : memref<8x16xf32, #tpu.memory_space<vmem>>, vector<8x16xf32>
    %c0_1 = arith.constant 0 : index
    %c0_2 = arith.constant 0 : index
    %1 = vector.load %arg2[%c0_1, %c0_2] : memref<16x32xf32, #tpu.memory_space<vmem>>, vector<16x32xf32>
    %cst = arith.constant dense<0.000000e+00> : vector<8x32xf32>
    %2 = tpu.matmul %0, %1, %cst {dimension_numbers = #tpu.dot_dimension_numbers<[1], [0], [0], [1], [0, 0, 1, 1], [], []>} : vector<8x16xf32>, vector<16x32xf32>, vector<8x32xf32> -> vector<8x32xf32>
    %c0_3 = arith.constant 0 : index
    %c0_4 = arith.constant 0 : index
    %3 = vector.load %arg3[%c0_3, %c0_4] : memref<1x32xf32, #tpu.memory_space<vmem>>, vector<1x32xf32>
    %4 = vector.broadcast %3 : vector<1x32xf32> to vector<8x32xf32>
    %5 = arith.addf %2, %4 : vector<8x32xf32>
    %cst_5 = arith.constant 0.000000e+00 : f32
    %6 = vector.broadcast %cst_5 : f32 to vector<8x32xf32>
    %7 = arith.maximumf %5, %6 : vector<8x32xf32>
    %c0_6 = arith.constant 0 : index
    %c0_7 = arith.constant 0 : index
    %8 = vector.load %arg4[%c0_6, %c0_7] : memref<32x32xf32, #tpu.memory_space<vmem>>, vector<32x32xf32>
    %cst_8 = arith.constant dense<0.000000e+00> : vector<8x32xf32>
    %9 = tpu.matmul %7, %8, %cst_8 {dimension_numbers = #tpu.dot_dimension_numbers<[1], [0], [0], [1], [0, 0, 1, 1], [], []>} : vector<8x32xf32>, vector<32x32xf32>, vector<8x32xf32> -> vector<8x32xf32>
    %c0_9 = arith.constant 0 : index
    %c0_10 = arith.constant 0 : index
    %10 = vector.load %arg5[%c0_9, %c0_10] : memref<1x32xf32, #tpu.memory_space<vmem>>, vector<1x32xf32>
    %11 = vector.broadcast %10 : vector<1x32xf32> to vector<8x32xf32>
    %12 = arith.addf %9, %11 : vector<8x32xf32>
    %cst_11 = arith.constant 0.000000e+00 : f32
    %13 = vector.broadcast %cst_11 : f32 to vector<8x32xf32>
    %14 = arith.maximumf %12, %13 : vector<8x32xf32>
    %c0_12 = arith.constant 0 : index
    %c0_13 = arith.constant 0 : index
    %15 = vector.load %arg6[%c0_12, %c0_13] : memref<32x128xf32, #tpu.memory_space<vmem>>, vector<32x128xf32>
    %cst_14 = arith.constant dense<0.000000e+00> : vector<8x128xf32>
    %16 = tpu.matmul %14, %15, %cst_14 {dimension_numbers = #tpu.dot_dimension_numbers<[1], [0], [0], [1], [0, 0, 1, 1], [], []>} : vector<8x32xf32>, vector<32x128xf32>, vector<8x128xf32> -> vector<8x128xf32>
    %c0_15 = arith.constant 0 : index
    %c0_16 = arith.constant 0 : index
    %17 = vector.load %arg7[%c0_15, %c0_16] : memref<1x128xf32, #tpu.memory_space<vmem>>, vector<1x128xf32>
    %18 = vector.broadcast %17 : vector<1x128xf32> to vector<8x128xf32>
    %19 = arith.addf %16, %18 : vector<8x128xf32>
    %c0_17 = arith.constant 0 : index
    %c0_18 = arith.constant 0 : index
    %20 = vector.load %arg8[%c0_17, %c0_18] : memref<1x128xf32, #tpu.memory_space<vmem>>, vector<1x128xf32>
    %21 = vector.broadcast %20 : vector<1x128xf32> to vector<8x128xf32>
    %22 = arith.maximumf %19, %21 : vector<8x128xf32>
    %c0_19 = arith.constant 0 : index
    %c0_20 = arith.constant 0 : index
    %23 = vector.load %arg9[%c0_19, %c0_20] : memref<1x128xf32, #tpu.memory_space<vmem>>, vector<1x128xf32>
    %24 = vector.broadcast %23 : vector<1x128xf32> to vector<8x128xf32>
    %25 = arith.minimumf %22, %24 : vector<8x128xf32>
    %c0_21 = arith.constant 0 : index
    %c0_22 = arith.constant 0 : index
    %26 = vector.load %arg10[%c0_21, %c0_22] : memref<8x128xf32, #tpu.memory_space<vmem>>, vector<8x128xf32>
    tpu.vector_store %arg10[%c0_21, %c0_22], %25 {strides = array<i32>} : memref<8x128xf32, #tpu.memory_space<vmem>>, vector<8x128xf32>,
    return
  }
  func.func @transform_0(%arg0: i32) -> (i32, i32) {
    %c0_i32 = arith.constant 0 : i32
    %c0_i32_0 = arith.constant 0 : i32
    return %arg0, %c0_i32 : i32, i32
  }
  func.func @transform_1(%arg0: i32) -> (i32, i32) {
    %c0_i32 = arith.constant 0 : i32
    %c0_i32_0 = arith.constant 0 : i32
    %c0_i32_1 = arith.constant 0 : i32
    return %c0_i32, %c0_i32_0 : i32, i32
  }
  func.func @transform_2(%arg0: i32) -> (i32, i32) {
    %c0_i32 = arith.constant 0 : i32
    %c0_i32_0 = arith.constant 0 : i32
    %c0_i32_1 = arith.constant 0 : i32
    return %c0_i32, %c0_i32_0 : i32, i32
  }
  func.func @transform_3(%arg0: i32) -> (i32, i32) {
    %c0_i32 = arith.constant 0 : i32
    %c0_i32_0 = arith.constant 0 : i32
    %c0_i32_1 = arith.constant 0 : i32
    return %c0_i32, %c0_i32_0 : i32, i32
  }
  func.func @transform_4(%arg0: i32) -> (i32, i32) {
    %c0_i32 = arith.constant 0 : i32
    %c0_i32_0 = arith.constant 0 : i32
    %c0_i32_1 = arith.constant 0 : i32
    return %c0_i32, %c0_i32_0 : i32, i32
  }
  func.func @transform_5(%arg0: i32) -> (i32, i32) {
    %c0_i32 = arith.constant 0 : i32
    %c0_i32_0 = arith.constant 0 : i32
    %c0_i32_1 = arith.constant 0 : i32
    return %c0_i32, %c0_i32_0 : i32, i32
  }
  func.func @transform_6(%arg0: i32) -> (i32, i32) {
    %c0_i32 = arith.constant 0 : i32
    %c0_i32_0 = arith.constant 0 : i32
    %c0_i32_1 = arith.constant 0 : i32
    return %c0_i32, %c0_i32_0 : i32, i32
  }
  func.func @transform_7(%arg0: i32) -> (i32, i32) {
    %c0_i32 = arith.constant 0 : i32
    %c0_i32_0 = arith.constant 0 : i32
    %c0_i32_1 = arith.constant 0 : i32
    return %c0_i32, %c0_i32_0 : i32, i32
  }
  func.func @transform_8(%arg0: i32) -> (i32, i32) {
    %c0_i32 = arith.constant 0 : i32
    %c0_i32_0 = arith.constant 0 : i32
    %c0_i32_1 = arith.constant 0 : i32
    return %c0_i32, %c0_i32_0 : i32, i32
  }
  func.func @transform_9(%arg0: i32) -> (i32, i32) {
    %c0_i32 = arith.constant 0 : i32
    %c0_i32_0 = arith.constant 0 : i32
    return %arg0, %c0_i32 : i32, i32
  }
}

module attributes {stable_mosaic.version = 11 : i64} {
  func.func @_policy_kernel(%arg0: i32, %arg1: memref<8x16xf32, #tpu.memory_space<vmem>>, %arg2: memref<16x32xf32, #tpu.memory_space<vmem>>, %arg3: memref<1x32xf32, #tpu.memory_space<vmem>>, %arg4: memref<32x32xf32, #tpu.memory_space<vmem>>, %arg5: memref<1x32xf32, #tpu.memory_space<vmem>>, %arg6: memref<32x128xf32, #tpu.memory_space<vmem>>, %arg7: memref<1x128xf32, #tpu.memory_space<vmem>>, %arg8: memref<1x128xf32, #tpu.memory_space<vmem>>, %arg9: memref<1x128xf32, #tpu.memory_space<vmem>>, %arg10: memref<8x128xf32, #tpu.memory_space<vmem>>) attributes {dimension_semantics = [#tpu.dimension_semantics<parallel>], iteration_bounds = array<i64: 1>, scalar_prefetch = 0 : i64, scratch_operands = 0 : i64, tpu.core_type = #tpu.core_type<tc>, window_params = [{transform_indices = @transform_0, window_bounds = array<i64: 8, 16>}, {pipeline_mode = #tpu.pipeline_mode<synchronous>, transform_indices = @transform_1, window_bounds = array<i64: 16, 32>}, {pipeline_mode = #tpu.pipeline_mode<synchronous>, transform_indices = @transform_2, window_bounds = array<i64: 1, 32>}, {pipeline_mode = #tpu.pipeline_mode<synchronous>, transform_indices = @transform_3, window_bounds = array<i64: 32, 32>}, {pipeline_mode = #tpu.pipeline_mode<synchronous>, transform_indices = @transform_4, window_bounds = array<i64: 1, 32>}, {pipeline_mode = #tpu.pipeline_mode<synchronous>, transform_indices = @transform_5, window_bounds = array<i64: 32, 128>}, {pipeline_mode = #tpu.pipeline_mode<synchronous>, transform_indices = @transform_6, window_bounds = array<i64: 1, 128>}, {pipeline_mode = #tpu.pipeline_mode<synchronous>, transform_indices = @transform_7, window_bounds = array<i64: 1, 128>}, {pipeline_mode = #tpu.pipeline_mode<synchronous>, transform_indices = @transform_8, window_bounds = array<i64: 1, 128>}, {transform_indices = @transform_9, window_bounds = array<i64: 8, 128>}]} {
    %c0 = arith.constant 0 : index
    %c0_0 = arith.constant 0 : index
    %0 = vector.load %arg1[%c0, %c0_0] : memref<8x16xf32, #tpu.memory_space<vmem>>, vector<8x16xf32>
    %c0_1 = arith.constant 0 : index
    %c0_2 = arith.constant 0 : index
    %1 = vector.load %arg2[%c0_1, %c0_2] : memref<16x32xf32, #tpu.memory_space<vmem>>, vector<16x32xf32>
    %cst = arith.constant dense<0.000000e+00> : vector<8x32xf32>
    %2 = tpu.matmul %0, %1, %cst {dimension_numbers = #tpu.dot_dimension_numbers<[1], [0], [0], [1], [0, 0, 1, 1], [], []>} : vector<8x16xf32>, vector<16x32xf32>, vector<8x32xf32> -> vector<8x32xf32>
    %c0_3 = arith.constant 0 : index
    %c0_4 = arith.constant 0 : index
    %3 = vector.load %arg3[%c0_3, %c0_4] : memref<1x32xf32, #tpu.memory_space<vmem>>, vector<1x32xf32>
    %4 = vector.broadcast %3 : vector<1x32xf32> to vector<8x32xf32>
    %5 = arith.addf %2, %4 : vector<8x32xf32>
    %cst_5 = arith.constant 0.000000e+00 : f32
    %6 = vector.broadcast %cst_5 : f32 to vector<8x32xf32>
    %7 = arith.maximumf %5, %6 : vector<8x32xf32>
    %c0_6 = arith.constant 0 : index
    %c0_7 = arith.constant 0 : index
    %8 = vector.load %arg4[%c0_6, %c0_7] : memref<32x32xf32, #tpu.memory_space<vmem>>, vector<32x32xf32>
    %cst_8 = arith.constant dense<0.000000e+00> : vector<8x32xf32>
    %9 = tpu.matmul %7, %8, %cst_8 {dimension_numbers = #tpu.dot_dimension_numbers<[1], [0], [0], [1], [0, 0, 1, 1], [], []>} : vector<8x32xf32>, vector<32x32xf32>, vector<8x32xf32> -> vector<8x32xf32>
    %c0_9 = arith.constant 0 : index
    %c0_10 = arith.constant 0 : index
    %10 = vector.load %arg5[%c0_9, %c0_10] : memref<1x32xf32, #tpu.memory_space<vmem>>, vector<1x32xf32>
    %11 = vector.broadcast %10 : vector<1x32xf32> to vector<8x32xf32>
    %12 = arith.addf %9, %11 : vector<8x32xf32>
    %cst_11 = arith.constant 0.000000e+00 : f32
    %13 = vector.broadcast %cst_11 : f32 to vector<8x32xf32>
    %14 = arith.maximumf %12, %13 : vector<8x32xf32>
    %c0_12 = arith.constant 0 : index
    %c0_13 = arith.constant 0 : index
    %15 = vector.load %arg6[%c0_12, %c0_13] : memref<32x128xf32, #tpu.memory_space<vmem>>, vector<32x128xf32>
    %cst_14 = arith.constant dense<0.000000e+00> : vector<8x128xf32>
    %16 = tpu.matmul %14, %15, %cst_14 {dimension_numbers = #tpu.dot_dimension_numbers<[1], [0], [0], [1], [0, 0, 1, 1], [], []>} : vector<8x32xf32>, vector<32x128xf32>, vector<8x128xf32> -> vector<8x128xf32>
    %c0_15 = arith.constant 0 : index
    %c0_16 = arith.constant 0 : index
    %17 = vector.load %arg7[%c0_15, %c0_16] : memref<1x128xf32, #tpu.memory_space<vmem>>, vector<1x128xf32>
    %18 = vector.broadcast %17 : vector<1x128xf32> to vector<8x128xf32>
    %19 = arith.addf %16, %18 : vector<8x128xf32>
    %c0_17 = arith.constant 0 : index
    %c0_18 = arith.constant 0 : index
    %20 = vector.load %arg8[%c0_17, %c0_18] : memref<1x128xf32, #tpu.memory_space<vmem>>, vector<1x128xf32>
    %21 = vector.broadcast %20 : vector<1x128xf32> to vector<8x128xf32>
    %22 = arith.maximumf %19, %21 : vector<8x128xf32>
    %c0_19 = arith.constant 0 : index
    %c0_20 = arith.constant 0 : index
    %23 = vector.load %arg9[%c0_19, %c0_20] : memref<1x128xf32, #tpu.memory_space<vmem>>, vector<1x128xf32>
    %24 = vector.broadcast %23 : vector<1x128xf32> to vector<8x128xf32>
    %25 = arith.minimumf %22, %24 : vector<8x128xf32>
    %c0_21 = arith.constant 0 : index
    %c0_22 = arith.constant 0 : index
    %26 = vector.load %arg10[%c0_21, %c0_22] : memref<8x128xf32, #tpu.memory_space<vmem>>, vector<8x128xf32>
    tpu.vector_store %arg10[%c0_21, %c0_22], %25 {strides = array<i32>} : memref<8x128xf32, #tpu.memory_space<vmem>>, vector<8x128xf32>,
    return
  }
  func.func @transform_0(%arg0: i32) -> (i32, i32) {
    %c0_i32 = arith.constant 0 : i32
    %c0_i32_0 = arith.constant 0 : i32
    return %arg0, %c0_i32 : i32, i32
  }
  func.func @transform_1(%arg0: i32) -> (i32, i32) {
    %c0_i32 = arith.constant 0 : i32
    %c0_i32_0 = arith.constant 0 : i32
    %c0_i32_1 = arith.constant 0 : i32
    return %c0_i32, %c0_i32_0 : i32, i32
  }
  func.func @transform_2(%arg0: i32) -> (i32, i32) {
    %c0_i32 = arith.constant 0 : i32
    %c0_i32_0 = arith.constant 0 : i32
    %c0_i32_1 = arith.constant 0 : i32
    return %c0_i32, %c0_i32_0 : i32, i32
  }
  func.func @transform_3(%arg0: i32) -> (i32, i32) {
    %c0_i32 = arith.constant 0 : i32
    %c0_i32_0 = arith.constant 0 : i32
    %c0_i32_1 = arith.constant 0 : i32
    return %c0_i32, %c0_i32_0 : i32, i32
  }
  func.func @transform_4(%arg0: i32) -> (i32, i32) {
    %c0_i32 = arith.constant 0 : i32
    %c0_i32_0 = arith.constant 0 : i32
    %c0_i32_1 = arith.constant 0 : i32
    return %c0_i32, %c0_i32_0 : i32, i32
  }
  func.func @transform_5(%arg0: i32) -> (i32, i32) {
    %c0_i32 = arith.constant 0 : i32
    %c0_i32_0 = arith.constant 0 : i32
    %c0_i32_1 = arith.constant 0 : i32
    return %c0_i32, %c0_i32_0 : i32, i32
  }
  func.func @transform_6(%arg0: i32) -> (i32, i32) {
    %c0_i32 = arith.constant 0 : i32
    %c0_i32_0 = arith.constant 0 : i32
    %c0_i32_1 = arith.constant 0 : i32
    return %c0_i32, %c0_i32_0 : i32, i32
  }
  func.func @transform_7(%arg0: i32) -> (i32, i32) {
    %c0_i32 = arith.constant 0 : i32
    %c0_i32_0 = arith.constant 0 : i32
    %c0_i32_1 = arith.constant 0 : i32
    return %c0_i32, %c0_i32_0 : i32, i32
  }
  func.func @transform_8(%arg0: i32) -> (i32, i32) {
    %c0_i32 = arith.constant 0 : i32
    %c0_i32_0 = arith.constant 0 : i32
    %c0_i32_1 = arith.constant 0 : i32
    return %c0_i32, %c0_i32_0 : i32, i32
  }
  func.func @transform_9(%arg0: i32) -> (i32, i32) {
    %c0_i32 = arith.constant 0 : i32
    %c0_i32_0 = arith.constant 0 : i32
    return %arg0, %c0_i32 : i32, i32
  }
}

</mosaic_0001>

<bundles_post_ra>
// kernel: tpu_custom_call.1
= control target key start
LH: loop header
LB: loop body
LE: loop exit
PB: predicated region body
PF: predicated region fallthrough
CT: control target
= control target key end

     0   :  { %14 = vsyncpa [#allocation3], 0  ;;  %s715_s0 = inlined_call_operand.hbm [shape: f32[8,16], index: 0, kind: input, shape index: {}]   ;;  %s716_s1 = inlined_call_operand.hbm [shape: f32[16,32], index: 1, kind: input, shape index: {}]   ;;  %s717_s2 = inlined_call_operand.vmem [shape: f32[1,32], index: 2, kind: input, shape index: {}]   ;;  %s718_s3 = inlined_call_operand.hbm [shape: f32[32,32], index: 3, kind: input, shape index: {}]   ;;  %s719_s4 = inlined_call_operand.vmem [shape: f32[1,32], index: 4, kind: input, shape index: {}]   ;;  %s720_s5 = inlined_call_operand.hbm [shape: f32[32,128], index: 5, kind: input, shape index: {}]   ;;  %s721_s6 = inlined_call_operand.vmem [shape: f32[1,128], index: 6, kind: input, shape index: {}]   ;;  %s722_s7 = inlined_call_operand.vmem [shape: f32[1,128], index: 7, kind: input, shape index: {}]   ;;  %s723_s8 = inlined_call_operand.vmem [shape: f32[1,128], index: 8, kind: input, shape index: {}]   ;;  %s724_s9 = inlined_call_operand.hbm [shape: f32[8,128], index: 9, kind: output, shape index: {}]  }
   0x1   :  { %15 = vsyncpa [#allocation6], 0 }
   0x2   :  { %16 = vsyncpa [#allocation9], 0 }
   0x3   :  { %17 = vsyncpa [#allocation4], 0  ;;  %s568_s30 = smov [#allocation5]   ;;  %s450_s13 = scalar_lea.hbm %s716_s1, 256 }
   0x4   :  { %s33_s10 = sshll.u32 %s568_s30, 4  ;;  %p451_p0 = scmp.ne.s32.totalorder %s716_s1, %s450_s13  ;;  %s34_s10 = int_to_ptr.vmem [resolvable:$true] %s33_s10 }
   0x5   :  { %p454_p1 = scmp.lt.u32.totalorder %s450_s13, %s716_s1 }
   0x7   :  { %p456_p2 = pnand %p454_p1, %p451_p0 }
   0x9   :  { %459 = shalt.err (!%p456_p2)
}
   0xa   :  { %s460_s18 = scalar_lea.vmem %s34_s10, 256  ;;  %p465_p4 = scmp.lt.s32.totalorder %s34_s10, %s34_s10 }
   0xb   :  { %p461_p3 = scmp.ne.s32.totalorder %s34_s10, %s460_s18  ;;  %p466_p5 = scmp.lt.s32.totalorder %s460_s18, %s460_s18 }
   0xd   :  { %p467_p6 = por %p466_p5, %p465_p4 }
   0xf   :  { %p468_p7 = pnand %p467_p6, %p461_p3 }
  0x11   :  { %471 = shalt.err (!%p468_p7)
}
  0x12   :  { %s569_s19 = smov 128   ;;  %s570_s20 = smov 8  }
  0x13   :  { %39 = dma.hbm_to_vmem [thread:$0]  %s716_s1, 256, %s34_s10, [#allocation6], %s569_s19, %s569_s19, %s570_s20  }
  0x14   :  { %s571_s23 = smov [#allocation2]   ;;  %s572_s25 = smov [#allocation7]  }
  0x15   :  { %s24_s24 = sshll.u32 %s571_s23, 4  ;;  %s47_s26 = sshll.u32 %s572_s25, 4  ;;  %s25_s24 = int_to_ptr.vmem [resolvable:$true] %s24_s24  ;;  %s48_s26 = int_to_ptr.vmem [resolvable:$true] %s47_s26 }
  0x16   :  { %s472_s29 = scalar_lea.hbm %s715_s0, 128 }
  0x17   :  { %p473_p8 = scmp.ne.s32.totalorder %s715_s0, %s472_s29  ;;  %p476_p9 = scmp.lt.u32.totalorder %s472_s29, %s715_s0 }
  0x19   :  { %p478_p10 = pnand %p476_p9, %p473_p8 }
  0x1b   :  { %481 = shalt.err (!%p478_p10)
}
  0x1c   :  { %s482_s1 = scalar_lea.vmem %s25_s24, 128  ;;  %p487_p12 = scmp.lt.s32.totalorder %s25_s24, %s25_s24 }
  0x1d   :  { %p483_p11 = scmp.ne.s32.totalorder %s25_s24, %s482_s1  ;;  %p488_p13 = scmp.lt.s32.totalorder %s482_s1, %s482_s1 }
  0x1f   :  { %p489_p0 = por %p488_p13, %p487_p12 }
  0x21   :  { %p490_p1 = pnand %p489_p0, %p483_p11 }
  0x23   :  { %493 = shalt.err (!%p490_p1)
}
  0x24   :  { %27 = dma.hbm_to_vmem [thread:$0]  %s715_s0, 128, %s25_s24, [#allocation3]  }
  0x25   :  { %s494_s17 = scalar_lea.hbm %s718_s3, 512 }
  0x26   :  { %p495_p2 = scmp.ne.s32.totalorder %s718_s3, %s494_s17  ;;  %p498_p3 = scmp.lt.u32.totalorder %s494_s17, %s718_s3 }
  0x28   :  { %p500_p4 = pnand %p498_p3, %p495_p2 }
  0x2a   :  { %503 = shalt.err (!%p500_p4)
}
  0x2b   :  { %s504_s25 = scalar_lea.vmem %s48_s26, 512  ;;  %p509_p6 = scmp.lt.s32.totalorder %s48_s26, %s48_s26 }
  0x2c   :  { %p505_p5 = scmp.ne.s32.totalorder %s48_s26, %s504_s25  ;;  %p510_p7 = scmp.lt.s32.totalorder %s504_s25, %s504_s25 }
  0x2e   :  { %p511_p8 = por %p510_p7, %p509_p6 }
  0x30   :  { %p512_p9 = pnand %p511_p8, %p505_p5 }
  0x32   :  { %515 = shalt.err (!%p512_p9)
}
  0x33   :  { %53 = dma.hbm_to_vmem [thread:$0]  %s718_s3, 512, %s48_s26, [#allocation6], %s569_s19, %s569_s19, %s570_s20  }
  0x34   :  { %s573_s27 = smov [#allocation8]   ;;  %s516_s11 = scalar_lea.hbm %s720_s5, 512 }
  0x35   :  { %s61_s28 = sshll.u32 %s573_s27, 4  ;;  %p517_p10 = scmp.ne.s32.totalorder %s720_s5, %s516_s11  ;;  %s62_s28 = int_to_ptr.vmem [resolvable:$true] %s61_s28 }
  0x36   :  { %p520_p11 = scmp.lt.u32.totalorder %s516_s11, %s720_s5 }
  0x38   :  { %p522_p12 = pnand %p520_p11, %p517_p10 }
  0x3a   :  { %525 = shalt.err (!%p522_p12)
}
  0x3b   :  { %s526_s14 = scalar_lea.vmem %s62_s28, 512  ;;  %p531_p0 = scmp.lt.s32.totalorder %s62_s28, %s62_s28 }
  0x3c   :  { %p527_p13 = scmp.ne.s32.totalorder %s62_s28, %s526_s14  ;;  %p532_p1 = scmp.lt.s32.totalorder %s526_s14, %s526_s14 }
  0x3e   :  { %p533_p2 = por %p532_p1, %p531_p0 }
  0x40   :  { %p534_p3 = pnand %p533_p2, %p527_p13 }
  0x42   :  { %537 = shalt.err (!%p534_p3)
}
  0x43   :  { %67 = dma.hbm_to_vmem [thread:$0]  %s720_s5, 512, %s62_s28, [#allocation9], %s569_s19, %s569_s19, %s570_s20  }
  0x44   :  { %560 = dma.done.wait [#allocation3], 128  }
  0x45   :  { %561 = vsyncadd [#allocation3], 4294967168 }
  0x46   :  { %562 = dma.done.wait [#allocation6], 768  }
  0x47   :  { %563 = vsyncadd [#allocation6], 4294966528 }
  0x48   :  { %564 = dma.done.wait [#allocation9], 512  }
  0x49   :  { %565 = vsyncadd [#allocation9], 4294966784  ;;  %v574_v0 = vmov 0.0|0.0   ;;  %vm575_vm0 = vmmov 0   ;;  %v576_v1 = vmov 0.0   ;;  %v87_v2 = vld [vmem:[#allocation5] sm:$0xff] }
  0x4a   :  { %425 = vmatprep.subr.bf16.mxu0 %v574_v0  ;;  %400 = vmatprep.mubr.msk.f32.mxu0 %vm575_vm0, %v576_v1  ;;  %v88_v3 = vld [vmem:[#allocation5 + $0x8] sm:$0xff]  ;;  %v171_v5 = vld [vmem:[#allocation7] sm:$0xff]  ;;  %v172_v6 = vld [vmem:[#allocation7 + $0x8] sm:$0xff]  ;;  %vm96_vm1 = vcmask 130048   ;;  %vm182_vm2 = vcmask 261120  }
  0x4b   :  { %428 = vmatprep.subr.bf16.mxu1 %v574_v0  ;;  %411 = vmatprep.mubr.msk.f32.mxu1 %vm575_vm0, %v576_v1  ;;  %v426_v4 = vpack.c.bf16 %v88_v3, %v87_v2  ;;  %v429_v7 = vpack.c.bf16 %v172_v6, %v171_v5  ;;  %v86_v8 = vld [vmem:[#allocation2] sm:$0xff]  ;;  %v173_v9 = vld [vmem:[#allocation7 + $0x10] sm:$0xff]  ;;  %v174_v10 = vld [vmem:[#allocation7 + $0x18] sm:$0xff] }
  0x4c   :  { %v432_v11 = vpack.c.bf16 %v174_v10, %v173_v9  ;;  %v257_v12 = vld [vmem:[#allocation8] sm:$0xff]  ;;  %v258_v13 = vld [vmem:[#allocation8 + $0x8] sm:$0xff]  ;;  %v259_v20 = vld [vmem:[#allocation8 + $0x10] sm:$0xff] }
  0x4d   :  { %427 = vmatpush3.bf16.msra.mxu0 %v426_v4  ;;  %430 = vmatpush3.bf16.msra.mxu1 %v429_v7  ;;  %v435_v14 = vpack.c.bf16 %v258_v13, %v257_v12  ;;  %v375_v15 = vld [vmem:[%s717_s2] ss:$0 sm:$0xff]  ;;  %v260_v21 = vld [vmem:[#allocation8 + $0x18] sm:$0xff] }
  0x4e   :  { %434 = vmatprep.subr.bf16.mxu0 %v574_v0  ;;  %431 = vmatprep.subr.bf16.mxu1 %v574_v0  ;;  %v438_v22 = vpack.c.bf16 %v260_v21, %v259_v20  ;;  %v377_v23 = vld [vmem:[%s719_s4] ss:$0 sm:$0xff]  ;;  %s577_s4 = smov [#allocation10]  }
  0x4f   :  { %v379_v28 = vld [vmem:[%s721_s6] ss:$0 sm:$0xff]  ;;  %s364_s23 = sshll.u32 %s577_s4, 4  ;;  %s365_s23 = int_to_ptr.vmem [resolvable:$true] %s364_s23 }
  0x50   :  { %401 = vmatmul.mubr.msk.f32.vlgmr.msra.gmra.mrb[0].mxu0 %vm96_vm1, %v86_v8  ;;  %v381_v30 = vld [vmem:[%s722_s7] ss:$0 sm:$0xff]  ;;  %s538_s25 = scalar_lea.vmem %s365_s23, 128  ;;  %p543_p5 = scmp.lt.s32.totalorder %s365_s23, %s365_s23 }
  0x51   :  { %422 = vmatprep.mubr.msk.f32.mxu0 %vm575_vm0, %v576_v1  ;;  %433 = vmatpush3.bf16.msra.mxu1 %v432_v11  ;;  %v382_v33 = vld [vmem:[%s723_s8] ss:$0 sm:$0xff]  ;;  %p539_p4 = scmp.ne.s32.totalorder %s365_s23, %s538_s25  ;;  %p544_p6 = scmp.lt.s32.totalorder %s538_s25, %s538_s25 }
  0x52   :  { %436 = vmatpush3.bf16.msra.mxu0 %v435_v14 }
  0x53   :  { %437 = vmatprep.subr.bf16.mxu0 %v574_v0  ;;  %p545_p7 = por %p544_p6, %p543_p5 }
  0x55   :  { %p546_p8 = pnand %p545_p7, %p539_p4 }
  0x56   :  { %439 = vmatpush3.bf16.msra.mxu0 %v438_v22 }
 0x123   :  { %v166_v16 = vpop.f32.mrb[0].mxu0 }
 0x124   :  { %v167_v17 = vadd.f32 %v375_v15, %v166_v16  ;;  %v402_v18 = vpop.f32.mrb[1].mxu0 }
 0x126   :  { %v170_v19 = vmax.f32 %v167_v17, 0.0 }
 0x128   :  { %412 = vmatmul.mubr.msk.f32.vlgmr.msra.gmra.mrb[0].mxu1 %vm182_vm2, %v170_v19 }
 0x1fb   :  { %v252_v24 = vpop.f32.mrb[0].mxu1 }
 0x1fc   :  { %v253_v25 = vadd.f32 %v377_v23, %v252_v24  ;;  %v413_v26 = vpop.f32.mrb[1].mxu1 }
 0x1fe   :  { %v256_v27 = vmax.f32 %v253_v25, 0.0 }
 0x200   :  { %423 = vmatmul.mubr.msk.f32.vlgmr.msra.gmra.mrb[2].mxu0 %vm182_vm2, %v256_v27 }
 0x2d3   :  { %v337_v29 = vpop.f32.mrb[2].mxu0 }
 0x2d4   :  { %v338_v31 = vadd.f32 %v379_v28, %v337_v29  ;;  %v424_v32 = vpop.f32.mrb[3].mxu0 }
 0x2d6   :  { %v348_v34 = vmax.f32 %v338_v31, %v381_v30 }
 0x2d8   :  { %v356_v35 = vmin.f32 %v348_v34, %v382_v33 }
 0x2da   :  { %357 = vst [vmem:[#allocation10] sm:$0xff] %v356_v35 }
 0x2db   :  { %549 = shalt.err (!%p546_p8)
}
 0x2dc   :  { %s550_s0 = scalar_lea.hbm %s724_s9, 128 }
 0x2dd   :  { %p551_p9 = scmp.ne.s32.totalorder %s724_s9, %s550_s0  ;;  %p554_p10 = scmp.lt.u32.totalorder %s550_s0, %s724_s9 }
 0x2df   :  { %p556_p11 = pnand %p554_p10, %p551_p9 }
 0x2e1   :  { %559 = shalt.err (!%p556_p11)
}
 0x2e2   :  { %367 = dma.vmem_to_hbm [thread:$0]  %s365_s23, 128, %s724_s9, [#allocation4]  }
 0x2e3   :  { %566 = dma.done.wait [#allocation4], 128  }
 0x2e4   :  { %567 = vsyncadd [#allocation4], 4294967168 }
 0x2e5   :  { %371 = vsyncpa [#allocation3], 1 }
 0x2e6   :  { %372 = vsyncpa [#allocation6], 1 }
 0x2e7   :  { %373 = vsyncpa [#allocation9], 1 }
 0x2e8   :  { %374 = vsyncpa [#allocation4], 1 }

// kernel: tpu_custom_call.1
= control target key start
LH: loop header
LB: loop body
LE: loop exit
PB: predicated region body
PF: predicated region fallthrough
CT: control target
= control target key end

     0   :  { %14 = vsyncpa [#allocation3], 0  ;;  %s715_s0 = inlined_call_operand.hbm [shape: f32[8,16], index: 0, kind: input, shape index: {}]   ;;  %s716_s1 = inlined_call_operand.hbm [shape: f32[16,32], index: 1, kind: input, shape index: {}]   ;;  %s717_s2 = inlined_call_operand.vmem [shape: f32[1,32], index: 2, kind: input, shape index: {}]   ;;  %s718_s3 = inlined_call_operand.hbm [shape: f32[32,32], index: 3, kind: input, shape index: {}]   ;;  %s719_s4 = inlined_call_operand.vmem [shape: f32[1,32], index: 4, kind: input, shape index: {}]   ;;  %s720_s5 = inlined_call_operand.hbm [shape: f32[32,128], index: 5, kind: input, shape index: {}]   ;;  %s721_s6 = inlined_call_operand.vmem [shape: f32[1,128], index: 6, kind: input, shape index: {}]   ;;  %s722_s7 = inlined_call_operand.vmem [shape: f32[1,128], index: 7, kind: input, shape index: {}]   ;;  %s723_s8 = inlined_call_operand.vmem [shape: f32[1,128], index: 8, kind: input, shape index: {}]   ;;  %s724_s9 = inlined_call_operand.hbm [shape: f32[8,128], index: 9, kind: output, shape index: {}]  }
   0x1   :  { %15 = vsyncpa [#allocation6], 0 }
   0x2   :  { %16 = vsyncpa [#allocation9], 0 }
   0x3   :  { %17 = vsyncpa [#allocation4], 0  ;;  %s568_s30 = smov [#allocation5]   ;;  %s450_s13 = scalar_lea.hbm %s716_s1, 256 }
   0x4   :  { %s33_s10 = sshll.u32 %s568_s30, 4  ;;  %p451_p0 = scmp.ne.s32.totalorder %s716_s1, %s450_s13  ;;  %s34_s10 = int_to_ptr.vmem [resolvable:$true] %s33_s10 }
   0x5   :  { %p454_p1 = scmp.lt.u32.totalorder %s450_s13, %s716_s1 }
   0x7   :  { %p456_p2 = pnand %p454_p1, %p451_p0 }
   0x9   :  { %459 = shalt.err (!%p456_p2)
}
   0xa   :  { %s460_s18 = scalar_lea.vmem %s34_s10, 256  ;;  %p465_p4 = scmp.lt.s32.totalorder %s34_s10, %s34_s10 }
   0xb   :  { %p461_p3 = scmp.ne.s32.totalorder %s34_s10, %s460_s18  ;;  %p466_p5 = scmp.lt.s32.totalorder %s460_s18, %s460_s18 }
   0xd   :  { %p467_p6 = por %p466_p5, %p465_p4 }
   0xf   :  { %p468_p7 = pnand %p467_p6, %p461_p3 }
  0x11   :  { %471 = shalt.err (!%p468_p7)
}
  0x12   :  { %s569_s19 = smov 128   ;;  %s570_s20 = smov 8  }
  0x13   :  { %39 = dma.hbm_to_vmem [thread:$0]  %s716_s1, 256, %s34_s10, [#allocation6], %s569_s19, %s569_s19, %s570_s20  }
  0x14   :  { %s571_s23 = smov [#allocation2]   ;;  %s572_s25 = smov [#allocation7]  }
  0x15   :  { %s24_s24 = sshll.u32 %s571_s23, 4  ;;  %s47_s26 = sshll.u32 %s572_s25, 4  ;;  %s25_s24 = int_to_ptr.vmem [resolvable:$true] %s24_s24  ;;  %s48_s26 = int_to_ptr.vmem [resolvable:$true] %s47_s26 }
  0x16   :  { %s472_s29 = scalar_lea.hbm %s715_s0, 128 }
  0x17   :  { %p473_p8 = scmp.ne.s32.totalorder %s715_s0, %s472_s29  ;;  %p476_p9 = scmp.lt.u32.totalorder %s472_s29, %s715_s0 }
  0x19   :  { %p478_p10 = pnand %p476_p9, %p473_p8 }
  0x1b   :  { %481 = shalt.err (!%p478_p10)
}
  0x1c   :  { %s482_s1 = scalar_lea.vmem %s25_s24, 128  ;;  %p487_p12 = scmp.lt.s32.totalorder %s25_s24, %s25_s24 }
  0x1d   :  { %p483_p11 = scmp.ne.s32.totalorder %s25_s24, %s482_s1  ;;  %p488_p13 = scmp.lt.s32.totalorder %s482_s1, %s482_s1 }
  0x1f   :  { %p489_p0 = por %p488_p13, %p487_p12 }
  0x21   :  { %p490_p1 = pnand %p489_p0, %p483_p11 }
  0x23   :  { %493 = shalt.err (!%p490_p1)
}
  0x24   :  { %27 = dma.hbm_to_vmem [thread:$0]  %s715_s0, 128, %s25_s24, [#allocation3]  }
  0x25   :  { %s494_s17 = scalar_lea.hbm %s718_s3, 512 }
  0x26   :  { %p495_p2 = scmp.ne.s32.totalorder %s718_s3, %s494_s17  ;;  %p498_p3 = scmp.lt.u32.totalorder %s494_s17, %s718_s3 }
  0x28   :  { %p500_p4 = pnand %p498_p3, %p495_p2 }
  0x2a   :  { %503 = shalt.err (!%p500_p4)
}
  0x2b   :  { %s504_s25 = scalar_lea.vmem %s48_s26, 512  ;;  %p509_p6 = scmp.lt.s32.totalorder %s48_s26, %s48_s26 }
  0x2c   :  { %p505_p5 = scmp.ne.s32.totalorder %s48_s26, %s504_s25  ;;  %p510_p7 = scmp.lt.s32.totalorder %s504_s25, %s504_s25 }
  0x2e   :  { %p511_p8 = por %p510_p7, %p509_p6 }
  0x30   :  { %p512_p9 = pnand %p511_p8, %p505_p5 }
  0x32   :  { %515 = shalt.err (!%p512_p9)
}
  0x33   :  { %53 = dma.hbm_to_vmem [thread:$0]  %s718_s3, 512, %s48_s26, [#allocation6], %s569_s19, %s569_s19, %s570_s20  }
  0x34   :  { %s573_s27 = smov [#allocation8]   ;;  %s516_s11 = scalar_lea.hbm %s720_s5, 512 }
  0x35   :  { %s61_s28 = sshll.u32 %s573_s27, 4  ;;  %p517_p10 = scmp.ne.s32.totalorder %s720_s5, %s516_s11  ;;  %s62_s28 = int_to_ptr.vmem [resolvable:$true] %s61_s28 }
  0x36   :  { %p520_p11 = scmp.lt.u32.totalorder %s516_s11, %s720_s5 }
  0x38   :  { %p522_p12 = pnand %p520_p11, %p517_p10 }
  0x3a   :  { %525 = shalt.err (!%p522_p12)
}
  0x3b   :  { %s526_s14 = scalar_lea.vmem %s62_s28, 512  ;;  %p531_p0 = scmp.lt.s32.totalorder %s62_s28, %s62_s28 }
  0x3c   :  { %p527_p13 = scmp.ne.s32.totalorder %s62_s28, %s526_s14  ;;  %p532_p1 = scmp.lt.s32.totalorder %s526_s14, %s526_s14 }
  0x3e   :  { %p533_p2 = por %p532_p1, %p531_p0 }
  0x40   :  { %p534_p3 = pnand %p533_p2, %p527_p13 }
  0x42   :  { %537 = shalt.err (!%p534_p3)
}
  0x43   :  { %67 = dma.hbm_to_vmem [thread:$0]  %s720_s5, 512, %s62_s28, [#allocation9], %s569_s19, %s569_s19, %s570_s20  }
  0x44   :  { %560 = dma.done.wait [#allocation3], 128  }
  0x45   :  { %561 = vsyncadd [#allocation3], 4294967168 }
  0x46   :  { %562 = dma.done.wait [#allocation6], 768  }
  0x47   :  { %563 = vsyncadd [#allocation6], 4294966528 }
  0x48   :  { %564 = dma.done.wait [#allocation9], 512  }
  0x49   :  { %565 = vsyncadd [#allocation9], 4294966784  ;;  %v574_v0 = vmov 0.0|0.0   ;;  %vm575_vm0 = vmmov 0   ;;  %v576_v1 = vmov 0.0   ;;  %v87_v2 = vld [vmem:[#allocation5] sm:$0xff] }
  0x4a   :  { %425 = vmatprep.subr.bf16.mxu0 %v574_v0  ;;  %400 = vmatprep.mubr.msk.f32.mxu0 %vm575_vm0, %v576_v1  ;;  %v88_v3 = vld [vmem:[#allocation5 + $0x8] sm:$0xff]  ;;  %v171_v5 = vld [vmem:[#allocation7] sm:$0xff]  ;;  %v172_v6 = vld [vmem:[#allocation7 + $0x8] sm:$0xff]  ;;  %vm96_vm1 = vcmask 130048   ;;  %vm182_vm2 = vcmask 261120  }
  0x4b   :  { %428 = vmatprep.subr.bf16.mxu1 %v574_v0  ;;  %411 = vmatprep.mubr.msk.f32.mxu1 %vm575_vm0, %v576_v1  ;;  %v426_v4 = vpack.c.bf16 %v88_v3, %v87_v2  ;;  %v429_v7 = vpack.c.bf16 %v172_v6, %v171_v5  ;;  %v86_v8 = vld [vmem:[#allocation2] sm:$0xff]  ;;  %v173_v9 = vld [vmem:[#allocation7 + $0x10] sm:$0xff]  ;;  %v174_v10 = vld [vmem:[#allocation7 + $0x18] sm:$0xff] }
  0x4c   :  { %v432_v11 = vpack.c.bf16 %v174_v10, %v173_v9  ;;  %v257_v12 = vld [vmem:[#allocation8] sm:$0xff]  ;;  %v258_v13 = vld [vmem:[#allocation8 + $0x8] sm:$0xff]  ;;  %v259_v20 = vld [vmem:[#allocation8 + $0x10] sm:$0xff] }
  0x4d   :  { %427 = vmatpush3.bf16.msra.mxu0 %v426_v4  ;;  %430 = vmatpush3.bf16.msra.mxu1 %v429_v7  ;;  %v435_v14 = vpack.c.bf16 %v258_v13, %v257_v12  ;;  %v375_v15 = vld [vmem:[%s717_s2] ss:$0 sm:$0xff]  ;;  %v260_v21 = vld [vmem:[#allocation8 + $0x18] sm:$0xff] }
  0x4e   :  { %434 = vmatprep.subr.bf16.mxu0 %v574_v0  ;;  %431 = vmatprep.subr.bf16.mxu1 %v574_v0  ;;  %v438_v22 = vpack.c.bf16 %v260_v21, %v259_v20  ;;  %v377_v23 = vld [vmem:[%s719_s4] ss:$0 sm:$0xff]  ;;  %s577_s4 = smov [#allocation10]  }
  0x4f   :  { %v379_v28 = vld [vmem:[%s721_s6] ss:$0 sm:$0xff]  ;;  %s364_s23 = sshll.u32 %s577_s4, 4  ;;  %s365_s23 = int_to_ptr.vmem [resolvable:$true] %s364_s23 }
  0x50   :  { %401 = vmatmul.mubr.msk.f32.vlgmr.msra.gmra.mrb[0].mxu0 %vm96_vm1, %v86_v8  ;;  %v381_v30 = vld [vmem:[%s722_s7] ss:$0 sm:$0xff]  ;;  %s538_s25 = scalar_lea.vmem %s365_s23, 128  ;;  %p543_p5 = scmp.lt.s32.totalorder %s365_s23, %s365_s23 }
  0x51   :  { %422 = vmatprep.mubr.msk.f32.mxu0 %vm575_vm0, %v576_v1  ;;  %433 = vmatpush3.bf16.msra.mxu1 %v432_v11  ;;  %v382_v33 = vld [vmem:[%s723_s8] ss:$0 sm:$0xff]  ;;  %p539_p4 = scmp.ne.s32.totalorder %s365_s23, %s538_s25  ;;  %p544_p6 = scmp.lt.s32.totalorder %s538_s25, %s538_s25 }
  0x52   :  { %436 = vmatpush3.bf16.msra.mxu0 %v435_v14 }
  0x53   :  { %437 = vmatprep.subr.bf16.mxu0 %v574_v0  ;;  %p545_p7 = por %p544_p6, %p543_p5 }
  0x55   :  { %p546_p8 = pnand %p545_p7, %p539_p4 }
  0x56   :  { %439 = vmatpush3.bf16.msra.mxu0 %v438_v22 }
 0x123   :  { %v166_v16 = vpop.f32.mrb[0].mxu0 }
 0x124   :  { %v167_v17 = vadd.f32 %v375_v15, %v166_v16  ;;  %v402_v18 = vpop.f32.mrb[1].mxu0 }
 0x126   :  { %v170_v19 = vmax.f32 %v167_v17, 0.0 }
 0x128   :  { %412 = vmatmul.mubr.msk.f32.vlgmr.msra.gmra.mrb[0].mxu1 %vm182_vm2, %v170_v19 }
 0x1fb   :  { %v252_v24 = vpop.f32.mrb[0].mxu1 }
 0x1fc   :  { %v253_v25 = vadd.f32 %v377_v23, %v252_v24  ;;  %v413_v26 = vpop.f32.mrb[1].mxu1 }
 0x1fe   :  { %v256_v27 = vmax.f32 %v253_v25, 0.0 }
 0x200   :  { %423 = vmatmul.mubr.msk.f32.vlgmr.msra.gmra.mrb[2].mxu0 %vm182_vm2, %v256_v27 }
 0x2d3   :  { %v337_v29 = vpop.f32.mrb[2].mxu0 }
 0x2d4   :  { %v338_v31 = vadd.f32 %v379_v28, %v337_v29  ;;  %v424_v32 = vpop.f32.mrb[3].mxu0 }
 0x2d6   :  { %v348_v34 = vmax.f32 %v338_v31, %v381_v30 }
 0x2d8   :  { %v356_v35 = vmin.f32 %v348_v34, %v382_v33 }
 0x2da   :  { %357 = vst [vmem:[#allocation10] sm:$0xff] %v356_v35 }
 0x2db   :  { %549 = shalt.err (!%p546_p8)
}
 0x2dc   :  { %s550_s0 = scalar_lea.hbm %s724_s9, 128 }
 0x2dd   :  { %p551_p9 = scmp.ne.s32.totalorder %s724_s9, %s550_s0  ;;  %p554_p10 = scmp.lt.u32.totalorder %s550_s0, %s724_s9 }
 0x2df   :  { %p556_p11 = pnand %p554_p10, %p551_p9 }
 0x2e1   :  { %559 = shalt.err (!%p556_p11)
}
 0x2e2   :  { %367 = dma.vmem_to_hbm [thread:$0]  %s365_s23, 128, %s724_s9, [#allocation4]  }
 0x2e3   :  { %566 = dma.done.wait [#allocation4], 128  }
 0x2e4   :  { %567 = vsyncadd [#allocation4], 4294967168 }
 0x2e5   :  { %371 = vsyncpa [#allocation3], 1 }
 0x2e6   :  { %372 = vsyncpa [#allocation6], 1 }
 0x2e7   :  { %373 = vsyncpa [#allocation9], 1 }
 0x2e8   :  { %374 = vsyncpa [#allocation4], 1 }

</bundles_post_ra>
